<compile_context>
chip_gen: v6e
topology: v6e:2x2x1
jax: 0.10.0
libtpu: 0.0.40
codegen_flags: <defaults>
</compile_context>

<pallas_src>
import functools
import math

import jax
import jax.numpy as jnp
from jax import lax
from jax.experimental import pallas as pl
from jax.experimental.pallas import tpu as pltpu

_INV_SQRT_2 = 1.0 / math.sqrt(2.0)
_GELU_TANH_C = math.sqrt(2.0 / math.pi)
_SMALL_N_FALLBACK = 512
_TILE_CAP_DEFAULT = 8192


def _round_up(n, m):
    return (n + m - 1) // m * m


def _gelu(x, *, approximate, act_dtype=jnp.float32):
    """GELU.  approximate=True is the tanh form (transcendental -> EUP slot);
    approximate=False is the exact erf form (PyTorch nn.GELU default),
    evaluated in f32."""
    x = x.astype(act_dtype)
    if approximate:
        inner = _GELU_TANH_C * (x + 0.044715 * (x * x * x))
        return 0.5 * x * (1.0 + jnp.tanh(inner))
    xf = x.astype(jnp.float32)
    y = 0.5 * xf * (1.0 + lax.erf(xf * _INV_SQRT_2))
    return y.astype(act_dtype)


def _routernet_kernel(in_ref, w1_ref, b1_ref, w2_ref, b2_ref, w3_ref, b3_ref,
                      o_ref, *, approximate, act_dtype):
    # Lane-dense transposed layout (batch rides the 128-lane axis):
    #   in_ref: (8, TN)   rows 0-1 = x^T, row 2 = t^T, rows 3-7 = 0
    #   w1_ref: (hid, 8)  w2_ref: (hid, hid)  w3_ref: (kp, hid)
    #   b*_ref: (out, 1)  o_ref: (kp, TN)
    h = jnp.dot(w1_ref[...], in_ref[...],
                preferred_element_type=jnp.float32) + b1_ref[...]
    h = _gelu(h, approximate=approximate, act_dtype=act_dtype)
    h = jnp.dot(w2_ref[...], h,
                preferred_element_type=jnp.float32) + b2_ref[...]
    h = _gelu(h, approximate=approximate, act_dtype=act_dtype)
    out = jnp.dot(w3_ref[...], h,
                  preferred_element_type=jnp.float32) + b3_ref[...]
    o_ref[...] = out.astype(o_ref.dtype)


def _num_tensorcores():
    """TensorCores per chip (2 on v7x megacore parts, else 1)."""
    try:
        kind = jax.devices()[0].device_kind.lower()
        return 2 if "v7" in kind else 1
    except Exception:  # pragma: no cover - detection is best-effort only
        return 1


def _choose_tiling(n, tile_cap, num_tc):
    """Pick (tile_n, steps, n_pad): tile_n is a multiple of 128 <= tile_cap,
    steps * tile_n >= n with minimal padding (never a mostly-padding last
    tile), and steps is a multiple of the TensorCore count whenever n allows
    it (balanced v7x megacore sharding)."""
    n128 = _round_up(max(n, 1), 128)
    cap = max(128, _round_up(tile_cap, 128))
    steps = -(-n128 // cap)
    if num_tc > 1 and n128 >= num_tc * 128:
        steps = _round_up(steps, num_tc)
    tile_n = _round_up(-(-n128 // steps), 128)
    return tile_n, steps, steps * tile_n


def _router_net_dense(x, t, params, approximate):
    """Fused-XLA fallback path (also the numerical reference)."""
    w1, b1, w2, b2, w3, b3 = params
    h = jnp.concatenate([x, t], axis=1)
    h = _gelu(h @ w1 + b1, approximate=approximate)
    h = _gelu(h @ w2 + b2, approximate=approximate)
    return h @ w3 + b3


@functools.partial(
    jax.jit,
    static_argnames=("tile_n", "approximate_gelu", "bf16_activations",
                     "force_pallas"))
def router_net_forward(x, t, params, *, tile_n=_TILE_CAP_DEFAULT,
                       approximate_gelu=True, bf16_activations=False,
                       force_pallas=False):
    """RouterNet.forward.  x: (N, 2) f32, t: (N, 1) f32 -> (N, k) f32.

    approximate_gelu=True (default) uses the tanh GELU (EUP slot); set False
    for the exact erf form to match PyTorch nn.GELU() bit-for-bit-ish.
    bf16_activations (v6e/v7x only, keep off on v5e) runs the GELUs and the
    two hid-K matmuls in bf16 with f32 accumulation; it implies tanh GELU.
    """
    w1, b1, w2, b2, w3, b3 = params
    N = x.shape[0]
    hid = w1.shape[1]
    k = w3.shape[1]

    if N == 0:
        return jnp.zeros((0, k), jnp.float32)

    approximate = approximate_gelu or bf16_activations
    if N < _SMALL_N_FALLBACK and not force_pallas:
        # Tiny batches (the module's typical usage) are faster as one fused
        # XLA dot chain than as a Pallas launch plus wrapper layout ops.
        return _router_net_dense(x, t, params, approximate)

    num_tc = _num_tensorcores()
    tn, steps, n_pad = _choose_tiling(N, tile_n, num_tc)
    pad = n_pad - N
    kp = _round_up(k, 8)  # sublane-dense output -> full-vreg unmasked stores

    # One sublane-aligned input slab: rows 0-1 = x^T, row 2 = t^T, rows 3-7 = 0.
    # (All of this pad/concat/transpose fuses under the surrounding jit.)
    feat = jnp.concatenate([x, t], axis=1)                          # (N, 3)
    in8 = jnp.pad(feat, ((0, pad), (0, 8 - 3))).T                   # (8, n_pad)

    act_dtype = jnp.bfloat16 if bf16_activations else jnp.float32
    w1p = jnp.pad(w1.T, ((0, 0), (0, 8 - 3)))                       # (hid, 8)
    w2T = w2.T.astype(act_dtype)                                    # (hid, hid)
    w3p = jnp.pad(w3.T, ((0, kp - k), (0, 0))).astype(act_dtype)    # (kp, hid)
    b1c = b1.reshape(hid, 1)
    b2c = b2.reshape(hid, 1)
    b3c = jnp.pad(b3.reshape(-1), (0, kp - k)).reshape(kp, 1)

    batch_spec = lambda rows: pl.BlockSpec((rows, tn), lambda i: (0, i))
    const_spec = lambda shape: pl.BlockSpec(shape, lambda i: (0, 0))

    kernel = functools.partial(_routernet_kernel, approximate=approximate,
                               act_dtype=act_dtype)

    outT = pl.pallas_call(
        kernel,
        out_shape=jax.ShapeDtypeStruct((kp, n_pad), jnp.float32),
        grid_spec=pltpu.PrefetchScalarGridSpec(
            num_scalar_prefetch=0,
            grid=(steps,),
            in_specs=[
                batch_spec(8),            # input slab tile (x^T | t^T | 0)
                const_spec((hid, 8)),     # W1 (padded)   -- VMEM resident
                const_spec((hid, 1)),     # b1
                const_spec((hid, hid)),   # W2
                const_spec((hid, 1)),     # b2
                const_spec((kp, hid)),    # W3 (padded)
                const_spec((kp, 1)),      # b3 (padded)
            ],
            out_specs=batch_spec(kp),
        ),
        compiler_params=pltpu.CompilerParams(
            dimension_semantics=("parallel",),
            vmem_limit_bytes=32 * 1024 * 1024,   # safe for v7x's 64 MiB VMEM
        ),
    )(in8, w1p, b1c, w2T, b2c, w3p, b3c)

    # TODO(synk): if the caller can consume the lane-dense (k, N) layout
    # directly, drop this final transpose entirely (it is fused under jit but
    # is still one extra copy over the tiny output).
    return outT[:k, :N].T


def init_params(key, hid=32, k=4):
    """Deterministic synthetic init matching nn.Linear shapes (weights stored
    transposed relative to PyTorch: W is (in, out), b is (out,))."""
    keys = jax.random.split(key, 6)

    def linear(kw, kb, fan_in, fan_out):
        bound = 1.0 / math.sqrt(fan_in)
        w = jax.random.uniform(kw, (fan_in, fan_out), jnp.float32, -bound, bound)
        b = jax.random.uniform(kb, (fan_out,), jnp.float32, -bound, bound)
        return w, b

    w1, b1 = linear(keys[0], keys[1], 3, hid)
    w2, b2 = linear(keys[2], keys[3], hid, hid)
    w3, b3 = linear(keys[4], keys[5], hid, k)
    return (w1, b1, w2, b2, w3, b3)


if __name__ == "__main__":
    key = jax.random.PRNGKey(0)
    k_p, k_x, k_t, k_x2, k_t2 = jax.random.split(key, 5)

    hid, k = 32, 4
    params = init_params(k_p, hid=hid, k=k)

    # Small batch (the module's typical usage): exercise both the forced
    # Pallas path and the fused-XLA small-N fallback.
    N = 8
    x = jax.random.normal(k_x, (N, 2), jnp.float32)
    t = jax.random.normal(k_t, (N, 1), jnp.float32)
    ref = _router_net_dense(x, t, params, approximate=True)

    out = jax.block_until_ready(
        router_net_forward(x, t, params, force_pallas=True))
    assert out.shape == (N, k)
    assert jnp.allclose(out, ref, atol=1e-4, rtol=1e-4), "pallas small-N mismatch"

    out_fb = jax.block_until_ready(router_net_forward(x, t, params))
    assert jnp.allclose(out_fb, ref, atol=1e-5, rtol=1e-5), "fallback mismatch"

    # Exact (erf) GELU path through the kernel (matches nn.GELU() default).
    out_exact = jax.block_until_ready(
        router_net_forward(x, t, params, approximate_gelu=False,
                           force_pallas=True))
    ref_exact = _router_net_dense(x, t, params, approximate=False)
    assert jnp.allclose(out_exact, ref_exact, atol=1e-4, rtol=1e-4), \
        "exact-GELU mismatch"

    # Larger, non-multiple batch: exercises the batch grid, minimal padding,
    # balanced tiling and the resident-weight pipeline.
    N2 = 3000
    x2 = jax.random.normal(k_x2, (N2, 2), jnp.float32)
    t2 = jax.random.normal(k_t2, (N2, 1), jnp.float32)
    out2 = jax.block_until_ready(router_net_forward(x2, t2, params))
    ref2 = _router_net_dense(x2, t2, params, approximate=True)
    assert out2.shape == (N2, k)
    assert jnp.allclose(out2, ref2, atol=2e-4, rtol=2e-4), "tiled mismatch"

    # TODO(synk): bf16_activations=True (v6e/v7x only) pairs bf16 tanh-GELUs
    # with bf16 W2/W3 matmuls; left off in this smoke test since it perturbs
    # numerics slightly and is unsupported on v5e.

    print("KERNEL_OK")
</pallas_src>

<mosaic_0001>
module attributes {stable_mosaic.version = 11 : i64} {
  func.func @_routernet_kernel(%arg0: i32, %arg1: memref<8x128xf32, #tpu.memory_space<vmem>>, %arg2: memref<32x8xf32, #tpu.memory_space<vmem>>, %arg3: memref<32x1xf32, #tpu.memory_space<vmem>>, %arg4: memref<32x32xf32, #tpu.memory_space<vmem>>, %arg5: memref<32x1xf32, #tpu.memory_space<vmem>>, %arg6: memref<8x32xf32, #tpu.memory_space<vmem>>, %arg7: memref<8x1xf32, #tpu.memory_space<vmem>>, %arg8: memref<8x128xf32, #tpu.memory_space<vmem>>) attributes {dimension_semantics = [#tpu.dimension_semantics<parallel>], iteration_bounds = array<i64: 1>, scalar_prefetch = 0 : i64, scratch_operands = 0 : i64, tpu.core_type = #tpu.core_type<tc>, window_params = [{transform_indices = @transform_0, window_bounds = array<i64: 8, 128>}, {pipeline_mode = #tpu.pipeline_mode<synchronous>, transform_indices = @transform_1, window_bounds = array<i64: 32, 8>}, {pipeline_mode = #tpu.pipeline_mode<synchronous>, transform_indices = @transform_2, window_bounds = array<i64: 32, 1>}, {pipeline_mode = #tpu.pipeline_mode<synchronous>, transform_indices = @transform_3, window_bounds = array<i64: 32, 32>}, {pipeline_mode = #tpu.pipeline_mode<synchronous>, transform_indices = @transform_4, window_bounds = array<i64: 32, 1>}, {pipeline_mode = #tpu.pipeline_mode<synchronous>, transform_indices = @transform_5, window_bounds = array<i64: 8, 32>}, {pipeline_mode = #tpu.pipeline_mode<synchronous>, transform_indices = @transform_6, window_bounds = array<i64: 8, 1>}, {transform_indices = @transform_7, window_bounds = array<i64: 8, 128>}]} {
    %c0 = arith.constant 0 : index
    %c0_0 = arith.constant 0 : index
    %0 = vector.load %arg2[%c0, %c0_0] : memref<32x8xf32, #tpu.memory_space<vmem>>, vector<32x8xf32>
    %c0_1 = arith.constant 0 : index
    %c0_2 = arith.constant 0 : index
    %1 = vector.load %arg1[%c0_1, %c0_2] : memref<8x128xf32, #tpu.memory_space<vmem>>, vector<8x128xf32>
    %cst = arith.constant dense<0.000000e+00> : vector<32x128xf32>
    %2 = tpu.matmul %0, %1, %cst {dimension_numbers = #tpu.dot_dimension_numbers<[1], [0], [0], [1], [0, 0, 1, 1], [], []>} : vector<32x8xf32>, vector<8x128xf32>, vector<32x128xf32> -> vector<32x128xf32>
    %c0_3 = arith.constant 0 : index
    %c0_4 = arith.constant 0 : index
    %3 = vector.load %arg3[%c0_3, %c0_4] : memref<32x1xf32, #tpu.memory_space<vmem>>, vector<32x1xf32>
    %4 = vector.broadcast %3 : vector<32x1xf32> to vector<32x128xf32>
    %5 = arith.addf %2, %4 : vector<32x128xf32>
    %6 = arith.mulf %5, %5 : vector<32x128xf32>
    %7 = arith.mulf %6, %5 : vector<32x128xf32>
    %cst_5 = arith.constant 4.471500e-02 : f32
    %8 = vector.broadcast %cst_5 : f32 to vector<32x128xf32>
    %9 = arith.mulf %8, %7 : vector<32x128xf32>
    %10 = arith.addf %5, %9 : vector<32x128xf32>
    %cst_6 = arith.constant 0.797884583 : f32
    %11 = vector.broadcast %cst_6 : f32 to vector<32x128xf32>
    %12 = arith.mulf %11, %10 : vector<32x128xf32>
    %cst_7 = arith.constant 5.000000e-01 : f32
    %13 = vector.broadcast %cst_7 : f32 to vector<32x128xf32>
    %14 = arith.mulf %13, %5 : vector<32x128xf32>
    %15 = math.tanh %12 : vector<32x128xf32>
    %cst_8 = arith.constant 1.000000e+00 : f32
    %16 = vector.broadcast %cst_8 : f32 to vector<32x128xf32>
    %17 = arith.addf %16, %15 : vector<32x128xf32>
    %18 = arith.mulf %14, %17 : vector<32x128xf32>
    %c0_9 = arith.constant 0 : index
    %c0_10 = arith.constant 0 : index
    %19 = vector.load %arg4[%c0_9, %c0_10] : memref<32x32xf32, #tpu.memory_space<vmem>>, vector<32x32xf32>
    %cst_11 = arith.constant dense<0.000000e+00> : vector<32x128xf32>
    %20 = tpu.matmul %19, %18, %cst_11 {dimension_numbers = #tpu.dot_dimension_numbers<[1], [0], [0], [1], [0, 0, 1, 1], [], []>} : vector<32x32xf32>, vector<32x128xf32>, vector<32x128xf32> -> vector<32x128xf32>
    %c0_12 = arith.constant 0 : index
    %c0_13 = arith.constant 0 : index
    %21 = vector.load %arg5[%c0_12, %c0_13] : memref<32x1xf32, #tpu.memory_space<vmem>>, vector<32x1xf32>
    %22 = vector.broadcast %21 : vector<32x1xf32> to vector<32x128xf32>
    %23 = arith.addf %20, %22 : vector<32x128xf32>
    %24 = arith.mulf %23, %23 : vector<32x128xf32>
    %25 = arith.mulf %24, %23 : vector<32x128xf32>
    %cst_14 = arith.constant 4.471500e-02 : f32
    %26 = vector.broadcast %cst_14 : f32 to vector<32x128xf32>
    %27 = arith.mulf %26, %25 : vector<32x128xf32>
    %28 = arith.addf %23, %27 : vector<32x128xf32>
    %cst_15 = arith.constant 0.797884583 : f32
    %29 = vector.broadcast %cst_15 : f32 to vector<32x128xf32>
    %30 = arith.mulf %29, %28 : vector<32x128xf32>
    %cst_16 = arith.constant 5.000000e-01 : f32
    %31 = vector.broadcast %cst_16 : f32 to vector<32x128xf32>
    %32 = arith.mulf %31, %23 : vector<32x128xf32>
    %33 = math.tanh %30 : vector<32x128xf32>
    %cst_17 = arith.constant 1.000000e+00 : f32
    %34 = vector.broadcast %cst_17 : f32 to vector<32x128xf32>
    %35 = arith.addf %34, %33 : vector<32x128xf32>
    %36 = arith.mulf %32, %35 : vector<32x128xf32>
    %c0_18 = arith.constant 0 : index
    %c0_19 = arith.constant 0 : index
    %37 = vector.load %arg6[%c0_18, %c0_19] : memref<8x32xf32, #tpu.memory_space<vmem>>, vector<8x32xf32>
    %cst_20 = arith.constant dense<0.000000e+00> : vector<8x128xf32>
    %38 = tpu.matmul %37, %36, %cst_20 {dimension_numbers = #tpu.dot_dimension_numbers<[1], [0], [0], [1], [0, 0, 1, 1], [], []>} : vector<8x32xf32>, vector<32x128xf32>, vector<8x128xf32> -> vector<8x128xf32>
    %c0_21 = arith.constant 0 : index
    %c0_22 = arith.constant 0 : index
    %39 = vector.load %arg7[%c0_21, %c0_22] : memref<8x1xf32, #tpu.memory_space<vmem>>, vector<8x1xf32>
    %40 = vector.broadcast %39 : vector<8x1xf32> to vector<8x128xf32>
    %41 = arith.addf %38, %40 : vector<8x128xf32>
    %c0_23 = arith.constant 0 : index
    %c0_24 = arith.constant 0 : index
    %42 = vector.load %arg8[%c0_23, %c0_24] : memref<8x128xf32, #tpu.memory_space<vmem>>, vector<8x128xf32>
    tpu.vector_store %arg8[%c0_23, %c0_24], %41 {strides = array<i32>} : memref<8x128xf32, #tpu.memory_space<vmem>>, vector<8x128xf32>,
    return
  }
  func.func @transform_0(%arg0: i32) -> (i32, i32) {
    %c0_i32 = arith.constant 0 : i32
    %c0_i32_0 = arith.constant 0 : i32
    return %c0_i32, %arg0 : i32, i32
  }
  func.func @transform_1(%arg0: i32) -> (i32, i32) {
    %c0_i32 = arith.constant 0 : i32
    %c0_i32_0 = arith.constant 0 : i32
    %c0_i32_1 = arith.constant 0 : i32
    return %c0_i32, %c0_i32_0 : i32, i32
  }
  func.func @transform_2(%arg0: i32) -> (i32, i32) {
    %c0_i32 = arith.constant 0 : i32
    %c0_i32_0 = arith.constant 0 : i32
    %c0_i32_1 = arith.constant 0 : i32
    return %c0_i32, %c0_i32_0 : i32, i32
  }
  func.func @transform_3(%arg0: i32) -> (i32, i32) {
    %c0_i32 = arith.constant 0 : i32
    %c0_i32_0 = arith.constant 0 : i32
    %c0_i32_1 = arith.constant 0 : i32
    return %c0_i32, %c0_i32_0 : i32, i32
  }
  func.func @transform_4(%arg0: i32) -> (i32, i32) {
    %c0_i32 = arith.constant 0 : i32
    %c0_i32_0 = arith.constant 0 : i32
    %c0_i32_1 = arith.constant 0 : i32
    return %c0_i32, %c0_i32_0 : i32, i32
  }
  func.func @transform_5(%arg0: i32) -> (i32, i32) {
    %c0_i32 = arith.constant 0 : i32
    %c0_i32_0 = arith.constant 0 : i32
    %c0_i32_1 = arith.constant 0 : i32
    return %c0_i32, %c0_i32_0 : i32, i32
  }
  func.func @transform_6(%arg0: i32) -> (i32, i32) {
    %c0_i32 = arith.constant 0 : i32
    %c0_i32_0 = arith.constant 0 : i32
    %c0_i32_1 = arith.constant 0 : i32
    return %c0_i32, %c0_i32_0 : i32, i32
  }
  func.func @transform_7(%arg0: i32) -> (i32, i32) {
    %c0_i32 = arith.constant 0 : i32
    %c0_i32_0 = arith.constant 0 : i32
    return %c0_i32, %arg0 : i32, i32
  }
}

</mosaic_0001>

<bundles_post_ra>
// kernel: router_net_forward.1
= control target key start
LH: loop header
LB: loop body
LE: loop exit
PB: predicated region body
PF: predicated region fallthrough
CT: control target
= control target key end

     0   :  { %vm55_vm0 = vcmask 64512   ;;  %v517_v3 = vmov 0   ;;  %vm217_vm1 = vcmask 261120   ;;  %vm519_vm2 = vmmov 0   ;;  %s629_s0 = inlined_call_operand.vmem [shape: f32[8,128], index: 0, kind: input, shape index: {}]   ;;  %s630_s1 = inlined_call_operand.vmem [shape: f32[32,8], index: 1, kind: input, shape index: {}]   ;;  %s631_s2 = inlined_call_operand.vmem [shape: f32[32,1], index: 2, kind: input, shape index: {}]   ;;  %s632_s4 = inlined_call_operand.vmem [shape: f32[32,1], index: 4, kind: input, shape index: {}]   ;;  %s633_s6 = inlined_call_operand.vmem [shape: f32[8,1], index: 6, kind: input, shape index: {}]   ;;  %s634_s3 = inlined_call_operand.vmem [shape: f32[32,32], index: 3, kind: input, shape index: {}]   ;;  %s635_s5 = inlined_call_operand.vmem [shape: f32[8,32], index: 5, kind: input, shape index: {}]   ;;  %s636_s7 = inlined_call_operand.vmem [shape: f32[8,128], index: 7, kind: output, shape index: {}]  }
   0x1   :  { %v30_v0 = vld [vmem:[%s629_s0] sm:$0xff]  ;;  %v27_v2 = vld [vmem:[%s630_s1 + $0x8] sm:$0xff]  ;;  %499 = vset.pattern.permute.xlu0 %v517_v3  ;;  %500 = vset.pattern.permute.xlu1 %v517_v3  ;;  %v28_v4 = vld [vmem:[%s630_s1 + $0x10] sm:$0xff]  ;;  %v518_v3 = vmov 0.0  }
   0x2   :  { %v26_v1 = vld [vmem:[%s630_s1] sm:$0xff]  ;;  %463 = vmatprep.subr.mxu0 %v30_v0  ;;  %v34_v5 = vld [vmem:[%s631_s2 + $0x18] sm:$0xff]  ;;  %v32_v6 = vld [vmem:[%s631_s2 + $0x8] sm:$0xff] }
   0x3   :  { %465 = vmatprep.mubr.msk.f32.mxu0 %vm55_vm0, %v26_v1  ;;  %464 = vmatpush3.msra.mxu0 %v30_v0  ;;  %v33_v7 = vld [vmem:[%s631_s2 + $0x10] sm:$0xff]  ;;  %v29_v8 = vld [vmem:[%s630_s1 + $0x18] sm:$0xff]  ;;  %v31_v9 = vld [vmem:[%s631_s2] sm:$0xff] }
   0x4   :  { %52 = vperm.xlu0 %499, %v34_v5   ;;  %466 = vmatmul.mubr.msk.f32.vlgmr.msra.gmra.mxu0 %vm55_vm0, %v27_v2  ;;  %v196_v10 = vld [vmem:[%s632_s4 + $0x18] sm:$0xff]  ;;  %v195_v11 = vld [vmem:[%s632_s4 + $0x10] sm:$0xff]  ;;  %v194_v12 = vld [vmem:[%s632_s4 + $0x8] sm:$0xff] }
   0x5   :  { %42 = vperm.xlu1 %500, %v32_v6   ;;  %468 = vmatprep.mubr.msk.f32.mxu0 %vm55_vm0, %v28_v4  ;;  %v193_v13 = vld [vmem:[%s632_s4] sm:$0xff]  ;;  %v190_v0 = vld [vmem:[%s634_s3 + $0x8] sm:$0xff]  ;;  %v191_v1 = vld [vmem:[%s634_s3 + $0x10] sm:$0xff] }
   0x6   :  { %v352_v14 = vld [vmem:[%s633_s6] sm:$0xff]  ;;  %v192_v2 = vld [vmem:[%s634_s3 + $0x18] sm:$0xff]  ;;  %485 = vmatprep.subr.mxu0 %v518_v3 }
   0x7   :  { %v189_v15 = vld [vmem:[%s634_s3] sm:$0xff] }
   0x8   :  { %47 = vperm.xlu0 %499, %v33_v7   ;;  %469 = vmatmul.mubr.msk.f32.gmra.mxu0 %vm55_vm0, %v29_v8 }
   0x9   :  { %37 = vperm.xlu1 %500, %v31_v9   ;;  %479 = vmatprep.mubr.msk.f32.mxu1 %vm217_vm1, %v189_v15 }
   0xa   :  { %493 = vmatprep.mubr.msk.f32.mxu0 %vm519_vm2, %v518_v3 }
   0xc   :  { %214 = vperm.xlu0 %499, %v196_v10  }
   0xd   :  { %209 = vperm.xlu1 %500, %v195_v11  }
  0x10   :  { %204 = vperm.xlu0 %499, %v194_v12  }
  0x11   :  { %199 = vperm.xlu1 %500, %v193_v13  }
  0x14   :  { %355 = vperm.xlu0 %499, %v352_v14  }
  0x7f   :  { %v53_v17 = vpop.permute.xlu0 %52 }
  0x80   :  { %v43_v16 = vpop.permute.xlu1 %42 }
  0x83   :  { %v48_v28 = vpop.permute.xlu0 %47 }
  0x84   :  { %v38_v20 = vpop.permute.xlu1 %37 }
  0x87   :  { %v215_v4 = vpop.permute.xlu0 %214 }
  0x88   :  { %v210_v5 = vpop.permute.xlu1 %209 }
  0x8b   :  { %v205_v6 = vpop.permute.xlu0 %204 }
  0x8c   :  { %v200_v9 = vpop.permute.xlu1 %199 }
  0xc4   :  { %v467_v18 = vpop.f32.mrf.mxu0 }
  0xc5   :  { %v140_v19 = vadd.f32 %v467_v18, %v43_v16 }
  0xc6   :  { %v134_v21 = vpop.f32.mrf.mxu0 }
  0xc7   :  { %v154_v22 = vmul.f32 %v140_v19, %v140_v19  ;;  %v135_v23 = vadd.f32 %v134_v21, %v38_v20  ;;  %v174_v59 = vmul.f32 0.5, %v140_v19 }
  0xc8   :  { %v470_v24 = vpop.f32.mrf.mxu0 }
  0xc9   :  { %v158_v25 = vmul.f32 %v154_v22, %v140_v19  ;;  %v153_v26 = vmul.f32 %v135_v23, %v135_v23  ;;  %v150_v27 = vadd.f32 %v470_v24, %v53_v17  ;;  %v173_v62 = vmul.f32 0.5, %v135_v23 }
  0xca   :  { %v144_v29 = vpop.f32.mrf.mxu0 }
  0xcb   :  { %v162_v30 = vmul.f32 0.044715, %v158_v25  ;;  %v157_v31 = vmul.f32 %v153_v26, %v135_v23  ;;  %v156_v32 = vmul.f32 %v150_v27, %v150_v27  ;;  %v145_v33 = vadd.f32 %v144_v29, %v48_v28 }
  0xcc   :  { %v176_v51 = vmul.f32 0.5, %v150_v27 }
  0xcd   :  { %v166_v34 = vadd.f32 %v162_v30, %v140_v19  ;;  %v161_v35 = vmul.f32 0.044715, %v157_v31  ;;  %v160_v36 = vmul.f32 %v156_v32, %v150_v27  ;;  %v155_v37 = vmul.f32 %v145_v33, %v145_v33 }
  0xce   :  { %v175_v55 = vmul.f32 0.5, %v145_v33 }
  0xcf   :  { %v165_v38 = vadd.f32 %v161_v35, %v135_v23  ;;  %v164_v39 = vmul.f32 0.044715, %v160_v36  ;;  %v159_v40 = vmul.f32 %v155_v37, %v145_v33  ;;  %v170_v41 = vmul.f32 0.7978846, %v166_v34 }
  0xd1   :  { %v163_v42 = vmul.f32 0.044715, %v159_v40  ;;  %v168_v43 = vadd.f32 %v164_v39, %v150_v27  ;;  %v169_v44 = vmul.f32 0.7978846, %v165_v38  ;;  %501 = vtanh.f32 %v170_v41 }
  0xd3   :  { %v167_v45 = vadd.f32 %v163_v42, %v145_v33  ;;  %v172_v46 = vmul.f32 0.7978846, %v168_v43 }
  0xd5   :  { %v171_v47 = vmul.f32 0.7978846, %v167_v45  ;;  %503 = vtanh.f32 %v172_v46 }
  0xd6   :  { %505 = vtanh.f32 %v169_v44 }
  0xd7   :  { %507 = vtanh.f32 %v171_v47 }
  0xde   :  { %v502_v48 = vpop.eup %501 }
  0xdf   :  { %v182_v57 = vadd.f32 1.0, %v502_v48 }
  0xe1   :  { %v186_v61 = vmul.f32 %v182_v57, %v174_v59 }
  0xe2   :  { %v504_v49 = vpop.eup %503 }
  0xe3   :  { %v506_v50 = vpop.eup %505  ;;  %v184_v52 = vadd.f32 1.0, %v504_v49 }
  0xe4   :  { %v508_v53 = vpop.eup %507  ;;  %v181_v60 = vadd.f32 1.0, %v506_v50 }
  0xe5   :  { %v188_v54 = vmul.f32 %v184_v52, %v176_v51  ;;  %v183_v56 = vadd.f32 1.0, %v508_v53  ;;  %v351_v52 = vld [vmem:[%s635_s5] sm:$0xff]  ;;  %v356_v53 = vpop.permute.xlu0 %355 }
  0xe6   :  { %v185_v63 = vmul.f32 %v181_v60, %v173_v62 }
  0xe7   :  { %471 = vmatprep.subr.mxu1 %v188_v54  ;;  %v187_v58 = vmul.f32 %v183_v56, %v175_v55 }
  0xe8   :  { %472 = vmatpush3.msra.mxu1 %v188_v54 }
  0xe9   :  { %473 = vmatprep.subr.mxu1 %v187_v58 }
  0xea   :  { %474 = vmatpush3.msra.mxu1 %v187_v58 }
  0xeb   :  { %475 = vmatprep.subr.mxu1 %v186_v61 }
  0xec   :  { %476 = vmatpush3.msra.mxu1 %v186_v61 }
  0xed   :  { %477 = vmatprep.subr.mxu1 %v185_v63 }
  0xee   :  { %478 = vmatpush3.msra.mxu1 %v185_v63 }
  0xef   :  { %480 = vmatmul.mubr.msk.f32.vlgmr.msra.gmra.mxu1 %vm217_vm1, %v190_v0 }
  0xf0   :  { %482 = vmatprep.mubr.msk.f32.mxu1 %vm217_vm1, %v191_v1 }
  0xf3   :  { %483 = vmatmul.mubr.msk.f32.gmra.mxu1 %vm217_vm1, %v192_v2 }
 0x1af   :  { %v481_v7 = vpop.f32.mrf.mxu1 }
 0x1b0   :  { %v302_v8 = vadd.f32 %v481_v7, %v205_v6 }
 0x1b1   :  { %v296_v10 = vpop.f32.mrf.mxu1 }
 0x1b2   :  { %v316_v11 = vmul.f32 %v302_v8, %v302_v8  ;;  %v297_v12 = vadd.f32 %v296_v10, %v200_v9  ;;  %v336_v46 = vmul.f32 0.5, %v302_v8 }
 0x1b3   :  { %v484_v13 = vpop.f32.mrf.mxu1 }
 0x1b4   :  { %v320_v14 = vmul.f32 %v316_v11, %v302_v8  ;;  %v315_v15 = vmul.f32 %v297_v12, %v297_v12  ;;  %v312_v16 = vadd.f32 %v484_v13, %v215_v4  ;;  %v335_v49 = vmul.f32 0.5, %v297_v12 }
 0x1b5   :  { %v306_v17 = vpop.f32.mrf.mxu1 }
 0x1b6   :  { %v324_v18 = vmul.f32 0.044715, %v320_v14  ;;  %v319_v19 = vmul.f32 %v315_v15, %v297_v12  ;;  %v318_v20 = vmul.f32 %v312_v16, %v312_v16  ;;  %v307_v21 = vadd.f32 %v306_v17, %v210_v5 }
 0x1b7   :  { %v338_v38 = vmul.f32 0.5, %v312_v16 }
 0x1b8   :  { %v323_v22 = vmul.f32 0.044715, %v319_v19  ;;  %v322_v23 = vmul.f32 %v318_v20, %v312_v16  ;;  %v328_v24 = vadd.f32 %v324_v18, %v302_v8  ;;  %v317_v25 = vmul.f32 %v307_v21, %v307_v21 }
 0x1b9   :  { %v337_v43 = vmul.f32 0.5, %v307_v21 }
 0x1ba   :  { %v327_v26 = vadd.f32 %v323_v22, %v297_v12  ;;  %v326_v27 = vmul.f32 0.044715, %v322_v23  ;;  %v321_v28 = vmul.f32 %v317_v25, %v307_v21  ;;  %v332_v30 = vmul.f32 0.7978846, %v328_v24 }
 0x1bc   :  { %v330_v29 = vadd.f32 %v326_v27, %v312_v16  ;;  %v325_v31 = vmul.f32 0.044715, %v321_v28  ;;  %v331_v32 = vmul.f32 0.7978846, %v327_v26 }
 0x1be   :  { %v334_v33 = vmul.f32 0.7978846, %v330_v29  ;;  %v329_v34 = vadd.f32 %v325_v31, %v307_v21 }
 0x1c0   :  { %509 = vtanh.f32 %v334_v33  ;;  %v333_v35 = vmul.f32 0.7978846, %v329_v34 }
 0x1c1   :  { %511 = vtanh.f32 %v332_v30 }
 0x1c2   :  { %513 = vtanh.f32 %v331_v32 }
 0x1c3   :  { %515 = vtanh.f32 %v333_v35 }
 0x1cd   :  { %v510_v36 = vpop.eup %509 }
 0x1ce   :  { %v512_v37 = vpop.eup %511  ;;  %v346_v39 = vadd.f32 1.0, %v510_v36 }
 0x1cf   :  { %v514_v40 = vpop.eup %513  ;;  %v344_v45 = vadd.f32 1.0, %v512_v37 }
 0x1d0   :  { %v516_v41 = vpop.eup %515  ;;  %v350_v42 = vmul.f32 %v346_v39, %v338_v38  ;;  %v343_v48 = vadd.f32 1.0, %v514_v40 }
 0x1d1   :  { %v345_v44 = vadd.f32 1.0, %v516_v41  ;;  %v348_v50 = vmul.f32 %v344_v45, %v336_v46 }
 0x1d2   :  { %486 = vmatpush3.msra.mxu0 %v350_v42  ;;  %v347_v51 = vmul.f32 %v343_v48, %v335_v49 }
 0x1d3   :  { %487 = vmatprep.subr.mxu0 %v518_v3  ;;  %v349_v47 = vmul.f32 %v345_v44, %v337_v43 }
 0x1d5   :  { %488 = vmatpush3.msra.mxu0 %v349_v47 }
 0x1d6   :  { %489 = vmatprep.subr.mxu0 %v518_v3 }
 0x1d7   :  { %490 = vmatpush3.msra.mxu0 %v348_v50 }
 0x1d8   :  { %491 = vmatprep.subr.mxu0 %v518_v3 }
 0x1d9   :  { %492 = vmatpush3.msra.mxu0 %v347_v51 }
 0x1da   :  { %494 = vmatmul.mubr.msk.f32.vlgmr.msra.gmra.mxu0 %vm217_vm1, %v351_v52 }
 0x29a   :  { %v427_v54 = vpop.f32.mrf.mxu0 }
 0x29b   :  { %v428_v55 = vadd.f32 %v427_v54, %v356_v53 }
 0x29c   :  { %v495_v56 = vpop.f32.mrf.mxu0 }
 0x29d   :  { %431 = vst [vmem:[%s636_s7] sm:$0xff] %v428_v55 }

</bundles_post_ra>
